<compile_context>
chip_gen: v7x
topology: tpu7x:2x2x1
jax: 0.10.0
libtpu: 0.0.40
codegen_flags: <defaults>
</compile_context>

<pallas_src>
import math

import jax
import jax.numpy as jnp
from jax.experimental import pallas as pl
from jax.experimental.pallas import tpu as pltpu

IN_F = 28 * 28      # 784
K_PAD = 896         # 784 rounded up to a multiple of 128 (lane-aligned K)
H1 = 512
H2 = 10
OUT = 10


def sparse_mlp_kernel(x_ref, w1_ref, b1_ref, w2_ref, b2_ref, w3_ref, b3_ref,
                      o_ref):
    # x tile: (TB, K_PAD) f32 -> bf16 for the MXU; accumulate in f32.
    x = x_ref[...].astype(jnp.bfloat16)

    # layer 1: 896 -> 512 (mask already fused into w1), bias, ReLU
    h1 = jnp.dot(x, w1_ref[...], preferred_element_type=jnp.float32) + b1_ref[...]
    h1 = jnp.maximum(h1, 0.0).astype(jnp.bfloat16)

    # layer 2: 512 -> 10, bias, ReLU
    h2 = jnp.dot(h1, w2_ref[...], preferred_element_type=jnp.float32) + b2_ref[...]
    h2 = jnp.maximum(h2, 0.0).astype(jnp.bfloat16)

    # layer 3: 10 -> 10, bias (no final ReLU, matching the nn.Sequential)
    o_ref[...] = (jnp.dot(h2, w3_ref[...], preferred_element_type=jnp.float32)
                  + b3_ref[...])


def _round_up(n, m):
    return (n + m - 1) // m * m


def sparse_mlp(x_nchw, kparams, tile_b=256):
    """x_nchw: (B, 1, 28, 28) float32.  Returns (B, 10) float32 logits."""
    w1, b1, w2, b2, w3, b3 = kparams
    B = x_nchw.shape[0]

    # Flatten (nn.Flatten) and zero-pad K: 784 -> 896.  W1's extra rows are
    # zero, so the padding does not change the result.
    x = x_nchw.reshape(B, IN_F).astype(jnp.float32)
    x = jnp.pad(x, ((0, 0), (0, K_PAD - IN_F)))

    # Batch tiling: big tiles for real batches, tight tile for tiny batches.
    tb = tile_b if B >= tile_b else _round_up(B, 8)
    b_pad = _round_up(B, tb)
    if b_pad != B:
        x = jnp.pad(x, ((0, b_pad - B), (0, 0)))
    grid = (b_pad // tb,)

    flops = 2 * b_pad * (K_PAD * H1 + H1 * H2 + H2 * OUT)
    bytes_accessed = (x.size * 4 + b_pad * OUT * 4
                      + (w1.size + w2.size + w3.size) * 2
                      + (b1.size + b2.size + b3.size) * 4)

    out = pl.pallas_call(
        sparse_mlp_kernel,
        out_shape=jax.ShapeDtypeStruct((b_pad, OUT), jnp.float32),
        grid=grid,
        in_specs=[
            pl.BlockSpec((tb, K_PAD), lambda i: (i, 0)),   # x batch tile
            pl.BlockSpec((K_PAD, H1), lambda i: (0, 0)),   # W1 (grid-resident)
            pl.BlockSpec((1, H1),     lambda i: (0, 0)),   # b1
            pl.BlockSpec((H1, H2),    lambda i: (0, 0)),   # W2
            pl.BlockSpec((1, H2),     lambda i: (0, 0)),   # b2
            pl.BlockSpec((H2, OUT),   lambda i: (0, 0)),   # W3
            pl.BlockSpec((1, OUT),    lambda i: (0, 0)),   # b3
        ],
        out_specs=pl.BlockSpec((tb, OUT), lambda i: (i, 0)),
        compiler_params=pltpu.CompilerParams(
            dimension_semantics=("parallel",)),
        cost_estimate=pl.CostEstimate(
            flops=flops, transcendentals=0, bytes_accessed=bytes_accessed),
    )(x, w1, b1, w2, b2, w3, b3)

    return out[:B]


def init_params(key):
    """Module-equivalent parameters with the sparsity mask already fused.

    nn.Linear(in, out): W (out, in) ~ U(-1/sqrt(in), 1/sqrt(in)), bias same.
    SparseLinear mask: rand(out, in) > 0.5, fixed at init.  Weights are stored
    transposed as (in, out) so the kernel computes x @ (W*M)^T-equivalent.
    Returns the f32 masked params (reference-precision source of truth).
    """
    dims = [(IN_F, H1), (H1, H2), (H2, OUT)]
    params = []
    for i, (fan_in, fan_out) in enumerate(dims):
        kw, kb, km = jax.random.split(jax.random.fold_in(key, i), 3)
        bound = 1.0 / math.sqrt(fan_in)
        w = jax.random.uniform(kw, (fan_in, fan_out), jnp.float32,
                               minval=-bound, maxval=bound)
        b = jax.random.uniform(kb, (1, fan_out), jnp.float32,
                               minval=-bound, maxval=bound)
        m = jax.random.uniform(km, (fan_in, fan_out), jnp.float32) > 0.5
        params += [jnp.where(m, w, 0.0), b]      # mask fused here, never in HBM
    return tuple(params)


def prepare_kernel_params(params_f32):
    """Pad W1's K dim to 896 and cast masked weights to bf16 for the kernel."""
    w1, b1, w2, b2, w3, b3 = params_f32
    w1p = jnp.pad(w1, ((0, K_PAD - IN_F), (0, 0))).astype(jnp.bfloat16)
    return (w1p, b1,
            w2.astype(jnp.bfloat16), b2,
            w3.astype(jnp.bfloat16), b3)


def reference_f32(x_nchw, params_f32):
    """Pure-f32 JAX reference with module semantics (masked weights)."""
    w1, b1, w2, b2, w3, b3 = params_f32
    x = x_nchw.reshape(x_nchw.shape[0], IN_F)
    h1 = jnp.maximum(x @ w1 + b1, 0.0)
    h2 = jnp.maximum(h1 @ w2 + b2, 0.0)
    return h2 @ w3 + b3


def reference_mixed(x_nchw, kparams):
    """Pure-JAX reference on the exact same bf16/f32-accum path as the kernel."""
    w1, b1, w2, b2, w3, b3 = kparams
    x = x_nchw.reshape(x_nchw.shape[0], IN_F).astype(jnp.float32)
    x = jnp.pad(x, ((0, 0), (0, K_PAD - IN_F))).astype(jnp.bfloat16)
    h1 = jnp.maximum(
        jnp.dot(x, w1, preferred_element_type=jnp.float32) + b1, 0.0
    ).astype(jnp.bfloat16)
    h2 = jnp.maximum(
        jnp.dot(h1, w2, preferred_element_type=jnp.float32) + b2, 0.0
    ).astype(jnp.bfloat16)
    return jnp.dot(h2, w3, preferred_element_type=jnp.float32) + b3


if __name__ == "__main__":
    key = jax.random.PRNGKey(0)
    kx, kp = jax.random.split(key)

    B = 8  # small batch, NCHW like the PyTorch module
    x = jax.random.normal(kx, (B, 1, 28, 28), dtype=jnp.float32)
    params_f32 = init_params(kp)
    kparams = prepare_kernel_params(params_f32)

    out = jax.block_until_ready(sparse_mlp(x, kparams))
    assert out.shape == (B, OUT)

    # Exact-path check: kernel vs pure-JAX on the identical mixed-precision math.
    ref_mp = reference_mixed(x, kparams)
    assert jnp.allclose(out, ref_mp, atol=1e-2, rtol=1e-2)

    # Module-semantics check: only bf16 weight/activation quantization separates
    # the kernel from the full-f32 PyTorch-equivalent forward.
    ref = reference_f32(x, params_f32)
    assert float(jnp.max(jnp.abs(out - ref))) < 0.05

    print("KERNEL_OK")
</pallas_src>

<mosaic_0001>
module attributes {stable_mosaic.version = 11 : i64} {
  func.func @sparse_mlp_kernel(%arg0: i32, %arg1: memref<8x896xf32, #tpu.memory_space<vmem>>, %arg2: memref<896x512xbf16, #tpu.memory_space<vmem>>, %arg3: memref<1x512xf32, #tpu.memory_space<vmem>>, %arg4: memref<512x10xbf16, #tpu.memory_space<vmem>>, %arg5: memref<1x10xf32, #tpu.memory_space<vmem>>, %arg6: memref<10x10xbf16, #tpu.memory_space<vmem>>, %arg7: memref<1x10xf32, #tpu.memory_space<vmem>>, %arg8: memref<8x10xf32, #tpu.memory_space<vmem>>) attributes {dimension_semantics = [#tpu.dimension_semantics<parallel>], iteration_bounds = array<i64: 1>, scalar_prefetch = 0 : i64, scratch_operands = 0 : i64, tpu.core_type = #tpu.core_type<tc>, window_params = [{transform_indices = @transform_0, window_bounds = array<i64: 8, 896>}, {pipeline_mode = #tpu.pipeline_mode<synchronous>, transform_indices = @transform_1, window_bounds = array<i64: 896, 512>}, {pipeline_mode = #tpu.pipeline_mode<synchronous>, transform_indices = @transform_2, window_bounds = array<i64: 1, 512>}, {pipeline_mode = #tpu.pipeline_mode<synchronous>, transform_indices = @transform_3, window_bounds = array<i64: 512, 10>}, {pipeline_mode = #tpu.pipeline_mode<synchronous>, transform_indices = @transform_4, window_bounds = array<i64: 1, 10>}, {pipeline_mode = #tpu.pipeline_mode<synchronous>, transform_indices = @transform_5, window_bounds = array<i64: 10, 10>}, {pipeline_mode = #tpu.pipeline_mode<synchronous>, transform_indices = @transform_6, window_bounds = array<i64: 1, 10>}, {transform_indices = @transform_7, window_bounds = array<i64: 8, 10>}]} {
    %c0 = arith.constant 0 : index
    %c0_0 = arith.constant 0 : index
    %0 = vector.load %arg1[%c0, %c0_0] : memref<8x896xf32, #tpu.memory_space<vmem>>, vector<8x896xf32>
    %1 = arith.truncf %0 : vector<8x896xf32> to vector<8x896xbf16>
    %c0_1 = arith.constant 0 : index
    %c0_2 = arith.constant 0 : index
    %2 = vector.load %arg2[%c0_1, %c0_2] : memref<896x512xbf16, #tpu.memory_space<vmem>>, vector<896x512xbf16>
    %cst = arith.constant dense<0.000000e+00> : vector<8x512xf32>
    %3 = tpu.matmul %1, %2, %cst {dimension_numbers = #tpu.dot_dimension_numbers<[1], [0], [0], [1], [0, 0, 1, 1], [], []>} : vector<8x896xbf16>, vector<896x512xbf16>, vector<8x512xf32> -> vector<8x512xf32>
    %c0_3 = arith.constant 0 : index
    %c0_4 = arith.constant 0 : index
    %4 = vector.load %arg3[%c0_3, %c0_4] : memref<1x512xf32, #tpu.memory_space<vmem>>, vector<1x512xf32>
    %5 = vector.broadcast %4 : vector<1x512xf32> to vector<8x512xf32>
    %6 = arith.addf %3, %5 : vector<8x512xf32>
    %cst_5 = arith.constant 0.000000e+00 : f32
    %7 = vector.broadcast %cst_5 : f32 to vector<8x512xf32>
    %8 = arith.maximumf %6, %7 : vector<8x512xf32>
    %9 = arith.truncf %8 : vector<8x512xf32> to vector<8x512xbf16>
    %c0_6 = arith.constant 0 : index
    %c0_7 = arith.constant 0 : index
    %10 = vector.load %arg4[%c0_6, %c0_7] : memref<512x10xbf16, #tpu.memory_space<vmem>>, vector<512x10xbf16>
    %cst_8 = arith.constant dense<0.000000e+00> : vector<8x10xf32>
    %11 = tpu.matmul %9, %10, %cst_8 {dimension_numbers = #tpu.dot_dimension_numbers<[1], [0], [0], [1], [0, 0, 1, 1], [], []>} : vector<8x512xbf16>, vector<512x10xbf16>, vector<8x10xf32> -> vector<8x10xf32>
    %c0_9 = arith.constant 0 : index
    %c0_10 = arith.constant 0 : index
    %12 = vector.load %arg5[%c0_9, %c0_10] : memref<1x10xf32, #tpu.memory_space<vmem>>, vector<1x10xf32>
    %13 = vector.broadcast %12 : vector<1x10xf32> to vector<8x10xf32>
    %14 = arith.addf %11, %13 : vector<8x10xf32>
    %cst_11 = arith.constant 0.000000e+00 : f32
    %15 = vector.broadcast %cst_11 : f32 to vector<8x10xf32>
    %16 = arith.maximumf %14, %15 : vector<8x10xf32>
    %17 = arith.truncf %16 : vector<8x10xf32> to vector<8x10xbf16>
    %c0_12 = arith.constant 0 : index
    %c0_13 = arith.constant 0 : index
    %18 = vector.load %arg6[%c0_12, %c0_13] : memref<10x10xbf16, #tpu.memory_space<vmem>>, vector<10x10xbf16>
    %cst_14 = arith.constant dense<0.000000e+00> : vector<8x10xf32>
    %19 = tpu.matmul %17, %18, %cst_14 {dimension_numbers = #tpu.dot_dimension_numbers<[1], [0], [0], [1], [0, 0, 1, 1], [], []>} : vector<8x10xbf16>, vector<10x10xbf16>, vector<8x10xf32> -> vector<8x10xf32>
    %c0_15 = arith.constant 0 : index
    %c0_16 = arith.constant 0 : index
    %20 = vector.load %arg7[%c0_15, %c0_16] : memref<1x10xf32, #tpu.memory_space<vmem>>, vector<1x10xf32>
    %21 = vector.broadcast %20 : vector<1x10xf32> to vector<8x10xf32>
    %22 = arith.addf %19, %21 : vector<8x10xf32>
    %c0_17 = arith.constant 0 : index
    %c0_18 = arith.constant 0 : index
    %23 = vector.load %arg8[%c0_17, %c0_18] : memref<8x10xf32, #tpu.memory_space<vmem>>, vector<8x10xf32>
    tpu.vector_store %arg8[%c0_17, %c0_18], %22 {strides = array<i32>} : memref<8x10xf32, #tpu.memory_space<vmem>>, vector<8x10xf32>,
    return
  }
  func.func @transform_0(%arg0: i32) -> (i32, i32) {
    %c0_i32 = arith.constant 0 : i32
    %c0_i32_0 = arith.constant 0 : i32
    return %arg0, %c0_i32 : i32, i32
  }
  func.func @transform_1(%arg0: i32) -> (i32, i32) {
    %c0_i32 = arith.constant 0 : i32
    %c0_i32_0 = arith.constant 0 : i32
    %c0_i32_1 = arith.constant 0 : i32
    return %c0_i32, %c0_i32_0 : i32, i32
  }
  func.func @transform_2(%arg0: i32) -> (i32, i32) {
    %c0_i32 = arith.constant 0 : i32
    %c0_i32_0 = arith.constant 0 : i32
    %c0_i32_1 = arith.constant 0 : i32
    return %c0_i32, %c0_i32_0 : i32, i32
  }
  func.func @transform_3(%arg0: i32) -> (i32, i32) {
    %c0_i32 = arith.constant 0 : i32
    %c0_i32_0 = arith.constant 0 : i32
    %c0_i32_1 = arith.constant 0 : i32
    return %c0_i32, %c0_i32_0 : i32, i32
  }
  func.func @transform_4(%arg0: i32) -> (i32, i32) {
    %c0_i32 = arith.constant 0 : i32
    %c0_i32_0 = arith.constant 0 : i32
    %c0_i32_1 = arith.constant 0 : i32
    return %c0_i32, %c0_i32_0 : i32, i32
  }
  func.func @transform_5(%arg0: i32) -> (i32, i32) {
    %c0_i32 = arith.constant 0 : i32
    %c0_i32_0 = arith.constant 0 : i32
    %c0_i32_1 = arith.constant 0 : i32
    return %c0_i32, %c0_i32_0 : i32, i32
  }
  func.func @transform_6(%arg0: i32) -> (i32, i32) {
    %c0_i32 = arith.constant 0 : i32
    %c0_i32_0 = arith.constant 0 : i32
    %c0_i32_1 = arith.constant 0 : i32
    return %c0_i32, %c0_i32_0 : i32, i32
  }
  func.func @transform_7(%arg0: i32) -> (i32, i32) {
    %c0_i32 = arith.constant 0 : i32
    %c0_i32_0 = arith.constant 0 : i32
    return %arg0, %c0_i32 : i32, i32
  }
}

</mosaic_0001>

<bundles_post_ra>
// kernel: tpu_custom_call.1
= control target key start
LH: loop header
LB: loop body
LE: loop exit
PB: predicated region body
PF: predicated region fallthrough
CT: control target
= control target key end

     0   :  { %12 = vsyncpa [#allocation3], 0  ;;  %s3145_s0 = inlined_call_operand.vmem [shape: f32[8,896], index: 0, kind: input, shape index: {}]   ;;  %s3146_s1 = inlined_call_operand.hbm [shape: bf16[896,512], index: 1, kind: input, shape index: {}]   ;;  %s3147_s2 = inlined_call_operand.vmem [shape: f32[1,512], index: 2, kind: input, shape index: {}]   ;;  %s3148_s3 = inlined_call_operand.vmem [shape: bf16[512,10], index: 3, kind: input, shape index: {}]   ;;  %s3149_s4 = inlined_call_operand.vmem [shape: f32[1,10], index: 4, kind: input, shape index: {}]   ;;  %s3150_s5 = inlined_call_operand.vmem [shape: bf16[10,10], index: 5, kind: input, shape index: {}]   ;;  %s3151_s6 = inlined_call_operand.vmem [shape: f32[1,10], index: 6, kind: input, shape index: {}]   ;;  %s3152_s7 = inlined_call_operand.hbm [shape: f32[8,10], index: 7, kind: output, shape index: {}]  }
   0x1   :  { %13 = vsyncpa [#allocation4], 0  ;;  %s2945_s24 = smov [#allocation2]   ;;  %s2897_s28 = scalar_lea.hbm %s3146_s1, 28672 }
   0x2   :  { %s21_s25 = sshll.u32 %s2945_s24, 4  ;;  %p2898_p0 = scmp.ne.s32.totalorder %s3146_s1, %s2897_s28  ;;  %s22_s25 = int_to_ptr.vmem [resolvable:$true] %s21_s25 }
   0x3   :  { %p2901_p1 = scmp.lt.u32.totalorder %s2897_s28, %s3146_s1 }
   0x5   :  { %p2903_p2 = pnand %p2901_p1, %p2898_p0 }
   0x7   :  { %2906 = shalt.err (!%p2903_p2)
}
   0x8   :  { %s2907_s10 = scalar_lea.vmem %s22_s25, 28672  ;;  %p2912_p4 = scmp.lt.s32.totalorder %s22_s25, %s22_s25 }
   0x9   :  { %p2908_p3 = scmp.ne.s32.totalorder %s22_s25, %s2907_s10  ;;  %p2913_p5 = scmp.lt.s32.totalorder %s2907_s10, %s2907_s10 }
   0xb   :  { %p2914_p6 = por %p2913_p5, %p2912_p4 }
   0xd   :  { %p2915_p7 = pnand %p2914_p6, %p2908_p3 }
   0xf   :  { %2918 = shalt.err (!%p2915_p7)
}
  0x10   :  { %s2946_s11 = smov 256   ;;  %s2947_s12 = smov 16  }
  0x11   :  { %27 = dma.hbm_to_vmem [thread:$0]  %s3146_s1, 28672, %s22_s25, [#allocation3], %s2946_s11, %s2946_s11, %s2947_s12  }
  0x12   :  { %2941 = dma.done.wait [#allocation3], 28672  }
  0x13   :  { %2942 = vsyncadd [#allocation3], 4294938624  ;;  %v2528_v0 = vld [vmem:[#allocation2 + $0x4] ss:$16 sps:$4 sm:$0xff]   ;;  %v2530_v1 = vld [vmem:[#allocation2 + $0xc] ss:$16 sps:$4 sm:$0xff]  }
  0x14   :  { %1422 = vmatprep.subr.bf16.mxu0 %v2528_v0  ;;  %v2532_v2 = vld [vmem:[#allocation2] ss:$16 sps:$4 sm:$0xff]   ;;  %v2533_v3 = vld [vmem:[#allocation2 + $0x8] ss:$16 sps:$4 sm:$0xff]   ;;  %1586 = vmatprep.subr.bf16.mxu1 %v2530_v1  ;;  %v2534_v4 = vld [vmem:[#allocation2 + $0x24] ss:$16 sps:$4 sm:$0xff]  }
  0x15   :  { %1423 = vmatpush1.bf16.msra.mxu0 %v2532_v2  ;;  %1587 = vmatpush1.bf16.msra.mxu1 %v2533_v3  ;;  %v2536_v5 = vld [vmem:[#allocation2 + $0x2c] ss:$16 sps:$4 sm:$0xff]   ;;  %v2538_v6 = vld [vmem:[#allocation2 + $0x20] ss:$16 sps:$4 sm:$0xff]   ;;  %v2539_v7 = vld [vmem:[#allocation2 + $0x28] ss:$16 sps:$4 sm:$0xff]  }
  0x16   :  { %1424 = vmatprep.subr.bf16.mxu0 %v2534_v4  ;;  %1588 = vmatprep.subr.bf16.mxu1 %v2536_v5  ;;  %v2540_v8 = vld [vmem:[#allocation2 + $0x44] ss:$16 sps:$4 sm:$0xff]   ;;  %v2542_v9 = vld [vmem:[#allocation2 + $0x4c] ss:$16 sps:$4 sm:$0xff]   ;;  %v2544_v10 = vld [vmem:[#allocation2 + $0x40] ss:$16 sps:$4 sm:$0xff]  }
  0x17   :  { %v2545_v11 = vld [vmem:[#allocation2 + $0x48] ss:$16 sps:$4 sm:$0xff]   ;;  %v2546_v12 = vld [vmem:[#allocation2 + $0x64] ss:$16 sps:$4 sm:$0xff]   ;;  %v2548_v13 = vld [vmem:[#allocation2 + $0x6c] ss:$16 sps:$4 sm:$0xff]  }
  0x18   :  { %v2550_v14 = vld [vmem:[#allocation2 + $0x60] ss:$16 sps:$4 sm:$0xff]   ;;  %v2551_v15 = vld [vmem:[#allocation2 + $0x68] ss:$16 sps:$4 sm:$0xff]   ;;  %v2552_v16 = vld [vmem:[#allocation2 + $0x84] ss:$16 sps:$4 sm:$0xff]  }
  0x19   :  { %1425 = vmatpush1.bf16.msra.mxu0 %v2538_v6  ;;  %1589 = vmatpush1.bf16.msra.mxu1 %v2539_v7  ;;  %v2554_v17 = vld [vmem:[#allocation2 + $0x8c] ss:$16 sps:$4 sm:$0xff]   ;;  %v2556_v18 = vld [vmem:[#allocation2 + $0x80] ss:$16 sps:$4 sm:$0xff]   ;;  %v2557_v19 = vld [vmem:[#allocation2 + $0x88] ss:$16 sps:$4 sm:$0xff]  }
  0x1a   :  { %1426 = vmatprep.subr.bf16.mxu0 %v2540_v8  ;;  %1590 = vmatprep.subr.bf16.mxu1 %v2542_v9  ;;  %v2558_v20 = vld [vmem:[#allocation2 + $0xa4] ss:$16 sps:$4 sm:$0xff]   ;;  %v2560_v21 = vld [vmem:[#allocation2 + $0xac] ss:$16 sps:$4 sm:$0xff]   ;;  %v2562_v22 = vld [vmem:[#allocation2 + $0xa0] ss:$16 sps:$4 sm:$0xff]  }
  0x1b   :  { %v2563_v23 = vld [vmem:[#allocation2 + $0xa8] ss:$16 sps:$4 sm:$0xff]   ;;  %v2564_v24 = vld [vmem:[#allocation2 + $0xc4] ss:$16 sps:$4 sm:$0xff]   ;;  %v2566_v25 = vld [vmem:[#allocation2 + $0xcc] ss:$16 sps:$4 sm:$0xff]  }
  0x1c   :  { %v2568_v26 = vld [vmem:[#allocation2 + $0xc0] ss:$16 sps:$4 sm:$0xff]   ;;  %v2569_v27 = vld [vmem:[#allocation2 + $0xc8] ss:$16 sps:$4 sm:$0xff]   ;;  %v2570_v28 = vld [vmem:[#allocation2 + $0xe4] ss:$16 sps:$4 sm:$0xff]  }
  0x1d   :  { %1427 = vmatpush1.bf16.msra.mxu0 %v2544_v10  ;;  %1591 = vmatpush1.bf16.msra.mxu1 %v2545_v11  ;;  %v2572_v29 = vld [vmem:[#allocation2 + $0xec] ss:$16 sps:$4 sm:$0xff]   ;;  %v2574_v30 = vld [vmem:[#allocation2 + $0xe0] ss:$16 sps:$4 sm:$0xff]   ;;  %v2575_v31 = vld [vmem:[#allocation2 + $0xe8] ss:$16 sps:$4 sm:$0xff]  }
  0x1e   :  { %1428 = vmatprep.subr.bf16.mxu0 %v2546_v12  ;;  %1592 = vmatprep.subr.bf16.mxu1 %v2548_v13  ;;  %v2576_v32 = vld [vmem:[#allocation2 + $0x104] ss:$16 sps:$4 sm:$0xff]   ;;  %v2578_v33 = vld [vmem:[#allocation2 + $0x10c] ss:$16 sps:$4 sm:$0xff]   ;;  %v2580_v34 = vld [vmem:[#allocation2 + $0x100] ss:$16 sps:$4 sm:$0xff]  }
  0x1f   :  { %v2581_v35 = vld [vmem:[#allocation2 + $0x108] ss:$16 sps:$4 sm:$0xff]   ;;  %v2582_v36 = vld [vmem:[#allocation2 + $0x124] ss:$16 sps:$4 sm:$0xff]   ;;  %v2584_v37 = vld [vmem:[#allocation2 + $0x12c] ss:$16 sps:$4 sm:$0xff]  }
  0x20   :  { %v2586_v38 = vld [vmem:[#allocation2 + $0x120] ss:$16 sps:$4 sm:$0xff]   ;;  %v2587_v39 = vld [vmem:[#allocation2 + $0x128] ss:$16 sps:$4 sm:$0xff]   ;;  %v2588_v40 = vld [vmem:[#allocation2 + $0x144] ss:$16 sps:$4 sm:$0xff]  }
  0x21   :  { %1429 = vmatpush1.bf16.msra.mxu0 %v2550_v14  ;;  %1593 = vmatpush1.bf16.msra.mxu1 %v2551_v15  ;;  %v2590_v41 = vld [vmem:[#allocation2 + $0x14c] ss:$16 sps:$4 sm:$0xff]   ;;  %v2592_v42 = vld [vmem:[#allocation2 + $0x140] ss:$16 sps:$4 sm:$0xff]   ;;  %v2593_v43 = vld [vmem:[#allocation2 + $0x148] ss:$16 sps:$4 sm:$0xff]  }
  0x22   :  { %1430 = vmatprep.subr.bf16.mxu0 %v2552_v16  ;;  %1594 = vmatprep.subr.bf16.mxu1 %v2554_v17  ;;  %v2594_v44 = vld [vmem:[#allocation2 + $0x164] ss:$16 sps:$4 sm:$0xff]   ;;  %v2596_v45 = vld [vmem:[#allocation2 + $0x16c] ss:$16 sps:$4 sm:$0xff]   ;;  %v2598_v47 = vld [vmem:[#allocation2 + $0x160] ss:$16 sps:$4 sm:$0xff]  }
  0x23   :  { %v43_v46 = vld [vmem:[%s3145_s0 + $0x8] sm:$0xff]  ;;  %v2600_v50 = vld [vmem:[#allocation2 + $0x184] ss:$16 sps:$4 sm:$0xff]   ;;  %v2604_v52 = vld [vmem:[#allocation2 + $0x180] ss:$16 sps:$4 sm:$0xff]   ;;  %vm2121_vm0 = vcmask 1044480  }
  0x24   :  { %v50_v48 = vpack.c.bf16 %v43_v46, %v43_v46  ;;  %v2599_v49 = vld [vmem:[#allocation2 + $0x168] ss:$16 sps:$4 sm:$0xff]   ;;  %v2602_v51 = vld [vmem:[#allocation2 + $0x18c] ss:$16 sps:$4 sm:$0xff]   ;;  %v2606_v54 = vld [vmem:[#allocation2 + $0x1a4] ss:$16 sps:$4 sm:$0xff]  }
  0x25   :  { %1431 = vmatpush1.bf16.msra.mxu0 %v2556_v18  ;;  %1595 = vmatpush1.bf16.msra.mxu1 %v2557_v19  ;;  %v2605_v53 = vld [vmem:[#allocation2 + $0x188] ss:$16 sps:$4 sm:$0xff]   ;;  %v2608_v55 = vld [vmem:[#allocation2 + $0x1ac] ss:$16 sps:$4 sm:$0xff]   ;;  %v2610_v56 = vld [vmem:[#allocation2 + $0x1a0] ss:$16 sps:$4 sm:$0xff]  }
  0x26   :  { %1432 = vmatprep.subr.bf16.mxu0 %v2558_v20  ;;  %1596 = vmatprep.subr.bf16.mxu1 %v2560_v21  ;;  %v2611_v57 = vld [vmem:[#allocation2 + $0x1a8] ss:$16 sps:$4 sm:$0xff]   ;;  %v2612_v58 = vld [vmem:[#allocation2 + $0x1c4] ss:$16 sps:$4 sm:$0xff]   ;;  %v2614_v59 = vld [vmem:[#allocation2 + $0x1cc] ss:$16 sps:$4 sm:$0xff]  }
  0x27   :  { %1454 = vmatprep.mubr.bf16.mxu0 %v50_v48  ;;  %1618 = vmatprep.mubr.bf16.mxu1 %v50_v48  ;;  %v2616_v60 = vld [vmem:[#allocation2 + $0x1c0] ss:$16 sps:$4 sm:$0xff]   ;;  %v2617_v61 = vld [vmem:[#allocation2 + $0x1c8] ss:$16 sps:$4 sm:$0xff]   ;;  %v2618_v62 = vld [vmem:[#allocation2 + $0x1e4] ss:$16 sps:$4 sm:$0xff]  }
  0x28   :  { %v2620_v63 = vld [vmem:[#allocation2 + $0x1ec] ss:$16 sps:$4 sm:$0xff]   ;;  %v2622_v0 = vld [vmem:[#allocation2 + $0x1e0] ss:$16 sps:$4 sm:$0xff]   ;;  %v2623_v1 = vld [vmem:[#allocation2 + $0x1e8] ss:$16 sps:$4 sm:$0xff]  }
  0x29   :  { %1433 = vmatpush1.bf16.msra.mxu0 %v2562_v22  ;;  %1597 = vmatpush1.bf16.msra.mxu1 %v2563_v23  ;;  %v42_v2 = vld [vmem:[%s3145_s0] sm:$0xff]  ;;  %v2629_v4 = vld [vmem:[#allocation2 + $0x20c] ss:$16 sps:$4 sm:$0xff]   ;;  %v2627_v7 = vld [vmem:[#allocation2 + $0x208] ss:$16 sps:$4 sm:$0xff]   ;;  %vm2950_vm1 = vmmov 0  }
  0x2a   :  { %1434 = vmatprep.subr.bf16.mxu0 %v2564_v24  ;;  %1598 = vmatprep.subr.bf16.mxu1 %v2566_v25  ;;  %v2626_v3 = vld [vmem:[#allocation2 + $0x204] ss:$16 sps:$4 sm:$0xff]   ;;  %v49_v5 = vpack.c.bf16 %v42_v2, %v42_v2  ;;  %v2624_v6 = vld [vmem:[#allocation2 + $0x200] ss:$16 sps:$4 sm:$0xff]   ;;  %v2635_v9 = vld [vmem:[#allocation2 + $0x22c] ss:$16 sps:$4 sm:$0xff]  }
  0x2b   :  { %v2632_v8 = vld [vmem:[#allocation2 + $0x224] ss:$16 sps:$4 sm:$0xff]   ;;  %v2630_v10 = vld [vmem:[#allocation2 + $0x220] ss:$16 sps:$4 sm:$0xff]   ;;  %v2633_v11 = vld [vmem:[#allocation2 + $0x228] ss:$16 sps:$4 sm:$0xff]  }
  0x2c   :  { %v2638_v12 = vld [vmem:[#allocation2 + $0x244] ss:$16 sps:$4 sm:$0xff]   ;;  %v2641_v13 = vld [vmem:[#allocation2 + $0x24c] ss:$16 sps:$4 sm:$0xff]   ;;  %v2636_v14 = vld [vmem:[#allocation2 + $0x240] ss:$16 sps:$4 sm:$0xff]  }
  0x2d   :  { %1435 = vmatpush1.bf16.msra.mxu0 %v2568_v26  ;;  %1599 = vmatpush1.bf16.msra.mxu1 %v2569_v27  ;;  %v2639_v15 = vld [vmem:[#allocation2 + $0x248] ss:$16 sps:$4 sm:$0xff]   ;;  %v2644_v16 = vld [vmem:[#allocation2 + $0x264] ss:$16 sps:$4 sm:$0xff]   ;;  %v2647_v17 = vld [vmem:[#allocation2 + $0x26c] ss:$16 sps:$4 sm:$0xff]  }
  0x2e   :  { %1436 = vmatprep.subr.bf16.mxu0 %v2570_v28  ;;  %1600 = vmatprep.subr.bf16.mxu1 %v2572_v29  ;;  %v2642_v18 = vld [vmem:[#allocation2 + $0x260] ss:$16 sps:$4 sm:$0xff]   ;;  %v2645_v19 = vld [vmem:[#allocation2 + $0x268] ss:$16 sps:$4 sm:$0xff]   ;;  %v2650_v20 = vld [vmem:[#allocation2 + $0x284] ss:$16 sps:$4 sm:$0xff]  }
  0x2f   :  { %v2653_v21 = vld [vmem:[#allocation2 + $0x28c] ss:$16 sps:$4 sm:$0xff]   ;;  %v2648_v22 = vld [vmem:[#allocation2 + $0x280] ss:$16 sps:$4 sm:$0xff]   ;;  %v2651_v23 = vld [vmem:[#allocation2 + $0x288] ss:$16 sps:$4 sm:$0xff]  }
  0x30   :  { %v2656_v24 = vld [vmem:[#allocation2 + $0x2a4] ss:$16 sps:$4 sm:$0xff]   ;;  %v2659_v25 = vld [vmem:[#allocation2 + $0x2ac] ss:$16 sps:$4 sm:$0xff]   ;;  %v2654_v26 = vld [vmem:[#allocation2 + $0x2a0] ss:$16 sps:$4 sm:$0xff]  }
  0x31   :  { %1437 = vmatpush1.bf16.msra.mxu0 %v2574_v30  ;;  %1601 = vmatpush1.bf16.msra.mxu1 %v2575_v31  ;;  %v2657_v27 = vld [vmem:[#allocation2 + $0x2a8] ss:$16 sps:$4 sm:$0xff]   ;;  %v2662_v28 = vld [vmem:[#allocation2 + $0x2c4] ss:$16 sps:$4 sm:$0xff]   ;;  %v2665_v29 = vld [vmem:[#allocation2 + $0x2cc] ss:$16 sps:$4 sm:$0xff]  }
  0x32   :  { %1438 = vmatprep.subr.bf16.mxu0 %v2576_v32  ;;  %1602 = vmatprep.subr.bf16.mxu1 %v2578_v33  ;;  %v45_v30 = vld [vmem:[%s3145_s0 + $0x18] sm:$0xff]  ;;  %v2660_v31 = vld [vmem:[#allocation2 + $0x2c0] ss:$16 sps:$4 sm:$0xff]   ;;  %v2686_v46 = vld [vmem:[#allocation2 + $0x344] ss:$16 sps:$4 sm:$0xff]   ;;  %vm2117_vm2 = vcmask 80896  }
  0x33   :  { %v52_v32 = vpack.c.bf16 %v45_v30, %v45_v30  ;;  %v2663_v33 = vld [vmem:[#allocation2 + $0x2c8] ss:$16 sps:$4 sm:$0xff]   ;;  %v2684_v48 = vld [vmem:[#allocation2 + $0x340] ss:$16 sps:$4 sm:$0xff]   ;;  %v2716_v2 = vld [vmem:[#allocation2 + $0x3e4] ss:$16 sps:$4 sm:$0xff]  }
  0x34   :  { %v2752_v30 = vld [vmem:[#allocation2 + $0x4a4] ss:$16 sps:$4 sm:$0xff]   ;;  %s2951_s22 = smov [#allocation5]  }
  0x35   :  { %1439 = vmatpush1.bf16.msra.mxu0 %v2580_v34  ;;  %1603 = vmatpush1.bf16.msra.mxu1 %v2581_v35  ;;  %v2668_v34 = vld [vmem:[#allocation2 + $0x2e4] ss:$16 sps:$4 sm:$0xff]   ;;  %v2671_v35 = vld [vmem:[#allocation2 + $0x2ec] ss:$16 sps:$4 sm:$0xff]  }
  0x36   :  { %1440 = vmatprep.subr.bf16.mxu0 %v2582_v36  ;;  %1604 = vmatprep.subr.bf16.mxu1 %v2584_v37  ;;  %v2666_v36 = vld [vmem:[#allocation2 + $0x2e0] ss:$16 sps:$4 sm:$0xff]   ;;  %v2669_v37 = vld [vmem:[#allocation2 + $0x2e8] ss:$16 sps:$4 sm:$0xff]  }
  0x39   :  { %1441 = vmatpush1.bf16.msra.mxu0 %v2586_v38  ;;  %1605 = vmatpush1.bf16.msra.mxu1 %v2587_v39  ;;  %v2674_v38 = vld [vmem:[#allocation2 + $0x304] ss:$16 sps:$4 sm:$0xff]   ;;  %v2677_v39 = vld [vmem:[#allocation2 + $0x30c] ss:$16 sps:$4 sm:$0xff]  }
  0x3a   :  { %1442 = vmatprep.subr.bf16.mxu0 %v2588_v40  ;;  %1606 = vmatprep.subr.bf16.mxu1 %v2590_v41  ;;  %v2672_v40 = vld [vmem:[#allocation2 + $0x300] ss:$16 sps:$4 sm:$0xff]   ;;  %v2675_v41 = vld [vmem:[#allocation2 + $0x308] ss:$16 sps:$4 sm:$0xff]  }
  0x3d   :  { %1443 = vmatpush1.bf16.msra.mxu0 %v2592_v42  ;;  %1607 = vmatpush1.bf16.msra.mxu1 %v2593_v43  ;;  %v2680_v42 = vld [vmem:[#allocation2 + $0x324] ss:$16 sps:$4 sm:$0xff]   ;;  %v2683_v43 = vld [vmem:[#allocation2 + $0x32c] ss:$16 sps:$4 sm:$0xff]  }
  0x3e   :  { %1444 = vmatprep.subr.bf16.mxu0 %v2594_v44  ;;  %1608 = vmatprep.subr.bf16.mxu1 %v2596_v45  ;;  %v2678_v44 = vld [vmem:[#allocation2 + $0x320] ss:$16 sps:$4 sm:$0xff]   ;;  %v2681_v45 = vld [vmem:[#allocation2 + $0x328] ss:$16 sps:$4 sm:$0xff]  }
  0x41   :  { %1445 = vmatpush1.bf16.msra.mxu0 %v2598_v47  ;;  %1609 = vmatpush1.bf16.msra.mxu1 %v2599_v49  ;;  %v2689_v47 = vld [vmem:[#allocation2 + $0x34c] ss:$16 sps:$4 sm:$0xff]   ;;  %v2687_v49 = vld [vmem:[#allocation2 + $0x348] ss:$16 sps:$4 sm:$0xff]  }
  0x42   :  { %1446 = vmatprep.subr.bf16.mxu0 %v2600_v50  ;;  %1610 = vmatprep.subr.bf16.mxu1 %v2602_v51  ;;  %v2692_v50 = vld [vmem:[#allocation2 + $0x364] ss:$16 sps:$4 sm:$0xff]   ;;  %v2695_v51 = vld [vmem:[#allocation2 + $0x36c] ss:$16 sps:$4 sm:$0xff]  }
  0x45   :  { %1447 = vmatpush1.bf16.msra.mxu0 %v2604_v52  ;;  %1611 = vmatpush1.bf16.msra.mxu1 %v2605_v53  ;;  %v2690_v52 = vld [vmem:[#allocation2 + $0x360] ss:$16 sps:$4 sm:$0xff]   ;;  %v2693_v53 = vld [vmem:[#allocation2 + $0x368] ss:$16 sps:$4 sm:$0xff]  }
  0x46   :  { %1448 = vmatprep.subr.bf16.mxu0 %v2606_v54  ;;  %1612 = vmatprep.subr.bf16.mxu1 %v2608_v55  ;;  %v2698_v54 = vld [vmem:[#allocation2 + $0x384] ss:$16 sps:$4 sm:$0xff]   ;;  %v2701_v55 = vld [vmem:[#allocation2 + $0x38c] ss:$16 sps:$4 sm:$0xff]  }
  0x49   :  { %1449 = vmatpush1.bf16.msra.mxu0 %v2610_v56  ;;  %1613 = vmatpush1.bf16.msra.mxu1 %v2611_v57  ;;  %v2696_v56 = vld [vmem:[#allocation2 + $0x380] ss:$16 sps:$4 sm:$0xff]   ;;  %v2699_v57 = vld [vmem:[#allocation2 + $0x388] ss:$16 sps:$4 sm:$0xff]  }
  0x4a   :  { %1450 = vmatprep.subr.bf16.mxu0 %v2612_v58  ;;  %1614 = vmatprep.subr.bf16.mxu1 %v2614_v59  ;;  %v2704_v58 = vld [vmem:[#allocation2 + $0x3a4] ss:$16 sps:$4 sm:$0xff]   ;;  %v2707_v59 = vld [vmem:[#allocation2 + $0x3ac] ss:$16 sps:$4 sm:$0xff]  }
  0x4d   :  { %1451 = vmatpush1.bf16.msra.mxu0 %v2616_v60  ;;  %1615 = vmatpush1.bf16.msra.mxu1 %v2617_v61  ;;  %v2702_v60 = vld [vmem:[#allocation2 + $0x3a0] ss:$16 sps:$4 sm:$0xff]   ;;  %v2705_v61 = vld [vmem:[#allocation2 + $0x3a8] ss:$16 sps:$4 sm:$0xff]  }
  0x4e   :  { %1452 = vmatprep.subr.bf16.mxu0 %v2618_v62  ;;  %1616 = vmatprep.subr.bf16.mxu1 %v2620_v63  ;;  %v2710_v62 = vld [vmem:[#allocation2 + $0x3c4] ss:$16 sps:$4 sm:$0xff]   ;;  %v2713_v63 = vld [vmem:[#allocation2 + $0x3cc] ss:$16 sps:$4 sm:$0xff]  }
  0x51   :  { %1453 = vmatpush1.bf16.msra.mxu0 %v2622_v0  ;;  %1617 = vmatpush1.bf16.msra.mxu1 %v2623_v1  ;;  %v2708_v0 = vld [vmem:[#allocation2 + $0x3c0] ss:$16 sps:$4 sm:$0xff]   ;;  %v2711_v1 = vld [vmem:[#allocation2 + $0x3c8] ss:$16 sps:$4 sm:$0xff]  }
  0x52   :  { %1463 = vmatprep.subr.bf16.mxu0 %v2626_v3  ;;  %1627 = vmatprep.subr.bf16.mxu1 %v2629_v4  ;;  %v2719_v3 = vld [vmem:[#allocation2 + $0x3ec] ss:$16 sps:$4 sm:$0xff]   ;;  %v2714_v4 = vld [vmem:[#allocation2 + $0x3e0] ss:$16 sps:$4 sm:$0xff]  }
  0x54   :  { %1455 = vmatmul.mubr.bf16.vlgmr.msra.gmra.mrb[0].mxu0 %v49_v5  ;;  %1619 = vmatmul.mubr.bf16.vlgmr.msra.gmra.mrb[0].mxu1 %v49_v5  ;;  %v2717_v5 = vld [vmem:[#allocation2 + $0x3e8] ss:$16 sps:$4 sm:$0xff]  }
  0x55   :  { %1464 = vmatpush1.bf16.msra.mxu0 %v2624_v6  ;;  %1628 = vmatpush1.bf16.msra.mxu1 %v2627_v7  ;;  %v2722_v6 = vld [vmem:[#allocation2 + $0x404] ss:$16 sps:$4 sm:$0xff]  }
  0x56   :  { %1465 = vmatprep.subr.bf16.mxu0 %v2632_v8  ;;  %1629 = vmatprep.subr.bf16.mxu1 %v2635_v9  ;;  %v44_v7 = vld [vmem:[%s3145_s0 + $0x10] sm:$0xff]  ;;  %v2725_v8 = vld [vmem:[#allocation2 + $0x40c] ss:$16 sps:$4 sm:$0xff]  }
  0x57   :  { %1495 = vmatprep.mubr.bf16.mxu0 %v52_v32  ;;  %1659 = vmatprep.mubr.bf16.mxu1 %v52_v32  ;;  %v2720_v9 = vld [vmem:[#allocation2 + $0x400] ss:$16 sps:$4 sm:$0xff]  }
  0x58   :  { %v2750_v32 = vld [vmem:[#allocation2 + $0x4a0] ss:$16 sps:$4 sm:$0xff]  }
  0x59   :  { %1466 = vmatpush1.bf16.msra.mxu0 %v2630_v10  ;;  %1630 = vmatpush1.bf16.msra.mxu1 %v2633_v11  ;;  %v2723_v10 = vld [vmem:[#allocation2 + $0x408] ss:$16 sps:$4 sm:$0xff]   ;;  %v51_v11 = vpack.c.bf16 %v44_v7, %v44_v7  ;;  %v2815_v7 = vld [vmem:[#allocation2 + $0x5ec] ss:$16 sps:$4 sm:$0xff]  }
  0x5a   :  { %1467 = vmatprep.subr.bf16.mxu0 %v2638_v12  ;;  %1631 = vmatprep.subr.bf16.mxu1 %v2641_v13  ;;  %v2728_v12 = vld [vmem:[#allocation2 + $0x424] ss:$16 sps:$4 sm:$0xff]   ;;  %v2731_v13 = vld [vmem:[#allocation2 + $0x42c] ss:$16 sps:$4 sm:$0xff]  }
  0x5d   :  { %1468 = vmatpush1.bf16.msra.mxu0 %v2636_v14  ;;  %1632 = vmatpush1.bf16.msra.mxu1 %v2639_v15  ;;  %v47_v14 = vld [vmem:[%s3145_s0 + $0x28] sm:$0xff] }
  0x5e   :  { %1469 = vmatprep.subr.bf16.mxu0 %v2644_v16  ;;  %1633 = vmatprep.subr.bf16.mxu1 %v2647_v17  ;;  %v54_v15 = vpack.c.bf16 %v47_v14, %v47_v14  ;;  %v2726_v16 = vld [vmem:[#allocation2 + $0x420] ss:$16 sps:$4 sm:$0xff]   ;;  %v2729_v17 = vld [vmem:[#allocation2 + $0x428] ss:$16 sps:$4 sm:$0xff]  }
  0x5f   :  { %v2816_v14 = vld [vmem:[#allocation2 + $0x600] ss:$16 sps:$4 sm:$0xff]  }
  0x61   :  { %1470 = vmatpush1.bf16.msra.mxu0 %v2642_v18  ;;  %1634 = vmatpush1.bf16.msra.mxu1 %v2645_v19  ;;  %v2734_v18 = vld [vmem:[#allocation2 + $0x444] ss:$16 sps:$4 sm:$0xff]   ;;  %v2737_v19 = vld [vmem:[#allocation2 + $0x44c] ss:$16 sps:$4 sm:$0xff]  }
  0x62   :  { %1471 = vmatprep.subr.bf16.mxu0 %v2650_v20  ;;  %1635 = vmatprep.subr.bf16.mxu1 %v2653_v21  ;;  %v2732_v20 = vld [vmem:[#allocation2 + $0x440] ss:$16 sps:$4 sm:$0xff]   ;;  %v2735_v21 = vld [vmem:[#allocation2 + $0x448] ss:$16 sps:$4 sm:$0xff]  }
  0x65   :  { %1472 = vmatpush1.bf16.msra.mxu0 %v2648_v22  ;;  %1636 = vmatpush1.bf16.msra.mxu1 %v2651_v23  ;;  %v2740_v22 = vld [vmem:[#allocation2 + $0x464] ss:$16 sps:$4 sm:$0xff]   ;;  %v2743_v23 = vld [vmem:[#allocation2 + $0x46c] ss:$16 sps:$4 sm:$0xff]  }
  0x66   :  { %1473 = vmatprep.subr.bf16.mxu0 %v2656_v24  ;;  %1637 = vmatprep.subr.bf16.mxu1 %v2659_v25  ;;  %v2738_v24 = vld [vmem:[#allocation2 + $0x460] ss:$16 sps:$4 sm:$0xff]   ;;  %v2741_v25 = vld [vmem:[#allocation2 + $0x468] ss:$16 sps:$4 sm:$0xff]  }
  0x69   :  { %1474 = vmatpush1.bf16.msra.mxu0 %v2654_v26  ;;  %1638 = vmatpush1.bf16.msra.mxu1 %v2657_v27  ;;  %v2746_v26 = vld [vmem:[#allocation2 + $0x484] ss:$16 sps:$4 sm:$0xff]   ;;  %v2749_v27 = vld [vmem:[#allocation2 + $0x48c] ss:$16 sps:$4 sm:$0xff]  }
  0x6a   :  { %1475 = vmatprep.subr.bf16.mxu0 %v2662_v28  ;;  %1639 = vmatprep.subr.bf16.mxu1 %v2665_v29  ;;  %v2744_v28 = vld [vmem:[#allocation2 + $0x480] ss:$16 sps:$4 sm:$0xff]   ;;  %v2747_v29 = vld [vmem:[#allocation2 + $0x488] ss:$16 sps:$4 sm:$0xff]  }
  0x6d   :  { %1476 = vmatpush1.bf16.msra.mxu0 %v2660_v31  ;;  %1640 = vmatpush1.bf16.msra.mxu1 %v2663_v33  ;;  %v2755_v31 = vld [vmem:[#allocation2 + $0x4ac] ss:$16 sps:$4 sm:$0xff]   ;;  %v2753_v33 = vld [vmem:[#allocation2 + $0x4a8] ss:$16 sps:$4 sm:$0xff]  }
  0x6e   :  { %1477 = vmatprep.subr.bf16.mxu0 %v2668_v34  ;;  %1641 = vmatprep.subr.bf16.mxu1 %v2671_v35  ;;  %v2758_v34 = vld [vmem:[#allocation2 + $0x4c4] ss:$16 sps:$4 sm:$0xff]   ;;  %v2761_v35 = vld [vmem:[#allocation2 + $0x4cc] ss:$16 sps:$4 sm:$0xff]  }
  0x71   :  { %1478 = vmatpush1.bf16.msra.mxu0 %v2666_v36  ;;  %1642 = vmatpush1.bf16.msra.mxu1 %v2669_v37  ;;  %v2756_v36 = vld [vmem:[#allocation2 + $0x4c0] ss:$16 sps:$4 sm:$0xff]   ;;  %v2759_v37 = vld [vmem:[#allocation2 + $0x4c8] ss:$16 sps:$4 sm:$0xff]  }
  0x72   :  { %1479 = vmatprep.subr.bf16.mxu0 %v2674_v38  ;;  %1643 = vmatprep.subr.bf16.mxu1 %v2677_v39  ;;  %v2764_v38 = vld [vmem:[#allocation2 + $0x4e4] ss:$16 sps:$4 sm:$0xff]   ;;  %v2767_v39 = vld [vmem:[#allocation2 + $0x4ec] ss:$16 sps:$4 sm:$0xff]  }
  0x75   :  { %1480 = vmatpush1.bf16.msra.mxu0 %v2672_v40  ;;  %1644 = vmatpush1.bf16.msra.mxu1 %v2675_v41  ;;  %v2762_v40 = vld [vmem:[#allocation2 + $0x4e0] ss:$16 sps:$4 sm:$0xff]   ;;  %v2765_v41 = vld [vmem:[#allocation2 + $0x4e8] ss:$16 sps:$4 sm:$0xff]  }
  0x76   :  { %1481 = vmatprep.subr.bf16.mxu0 %v2680_v42  ;;  %1645 = vmatprep.subr.bf16.mxu1 %v2683_v43  ;;  %v2770_v42 = vld [vmem:[#allocation2 + $0x504] ss:$16 sps:$4 sm:$0xff]   ;;  %v2773_v43 = vld [vmem:[#allocation2 + $0x50c] ss:$16 sps:$4 sm:$0xff]  }
  0x79   :  { %1482 = vmatpush1.bf16.msra.mxu0 %v2678_v44  ;;  %1646 = vmatpush1.bf16.msra.mxu1 %v2681_v45  ;;  %v2768_v44 = vld [vmem:[#allocation2 + $0x500] ss:$16 sps:$4 sm:$0xff]   ;;  %v2771_v45 = vld [vmem:[#allocation2 + $0x508] ss:$16 sps:$4 sm:$0xff]  }
  0x7a   :  { %1483 = vmatprep.subr.bf16.mxu0 %v2686_v46  ;;  %1647 = vmatprep.subr.bf16.mxu1 %v2689_v47  ;;  %v2776_v46 = vld [vmem:[#allocation2 + $0x524] ss:$16 sps:$4 sm:$0xff]   ;;  %v2779_v47 = vld [vmem:[#allocation2 + $0x52c] ss:$16 sps:$4 sm:$0xff]  }
  0x7d   :  { %1484 = vmatpush1.bf16.msra.mxu0 %v2684_v48  ;;  %1648 = vmatpush1.bf16.msra.mxu1 %v2687_v49  ;;  %v2774_v48 = vld [vmem:[#allocation2 + $0x520] ss:$16 sps:$4 sm:$0xff]   ;;  %v2777_v49 = vld [vmem:[#allocation2 + $0x528] ss:$16 sps:$4 sm:$0xff]  }
  0x7e   :  { %1485 = vmatprep.subr.bf16.mxu0 %v2692_v50  ;;  %1649 = vmatprep.subr.bf16.mxu1 %v2695_v51  ;;  %v2782_v50 = vld [vmem:[#allocation2 + $0x544] ss:$16 sps:$4 sm:$0xff]   ;;  %v2785_v51 = vld [vmem:[#allocation2 + $0x54c] ss:$16 sps:$4 sm:$0xff]  }
  0x81   :  { %1486 = vmatpush1.bf16.msra.mxu0 %v2690_v52  ;;  %1650 = vmatpush1.bf16.msra.mxu1 %v2693_v53  ;;  %v2780_v52 = vld [vmem:[#allocation2 + $0x540] ss:$16 sps:$4 sm:$0xff]   ;;  %v2783_v53 = vld [vmem:[#allocation2 + $0x548] ss:$16 sps:$4 sm:$0xff]  }
  0x82   :  { %1487 = vmatprep.subr.bf16.mxu0 %v2698_v54  ;;  %1651 = vmatprep.subr.bf16.mxu1 %v2701_v55  ;;  %v2788_v54 = vld [vmem:[#allocation2 + $0x564] ss:$16 sps:$4 sm:$0xff]   ;;  %v2791_v55 = vld [vmem:[#allocation2 + $0x56c] ss:$16 sps:$4 sm:$0xff]  }
  0x85   :  { %1488 = vmatpush1.bf16.msra.mxu0 %v2696_v56  ;;  %1652 = vmatpush1.bf16.msra.mxu1 %v2699_v57  ;;  %v2786_v56 = vld [vmem:[#allocation2 + $0x560] ss:$16 sps:$4 sm:$0xff]   ;;  %v2789_v57 = vld [vmem:[#allocation2 + $0x568] ss:$16 sps:$4 sm:$0xff]  }
  0x86   :  { %1489 = vmatprep.subr.bf16.mxu0 %v2704_v58  ;;  %1653 = vmatprep.subr.bf16.mxu1 %v2707_v59  ;;  %v2794_v58 = vld [vmem:[#allocation2 + $0x584] ss:$16 sps:$4 sm:$0xff]   ;;  %v2797_v59 = vld [vmem:[#allocation2 + $0x58c] ss:$16 sps:$4 sm:$0xff]  }
  0x89   :  { %1490 = vmatpush1.bf16.msra.mxu0 %v2702_v60  ;;  %1654 = vmatpush1.bf16.msra.mxu1 %v2705_v61  ;;  %v2792_v60 = vld [vmem:[#allocation2 + $0x580] ss:$16 sps:$4 sm:$0xff]   ;;  %v2795_v61 = vld [vmem:[#allocation2 + $0x588] ss:$16 sps:$4 sm:$0xff]  }
  0x8a   :  { %1491 = vmatprep.subr.bf16.mxu0 %v2710_v62  ;;  %1655 = vmatprep.subr.bf16.mxu1 %v2713_v63  ;;  %v2800_v62 = vld [vmem:[#allocation2 + $0x5a4] ss:$16 sps:$4 sm:$0xff]   ;;  %v2803_v63 = vld [vmem:[#allocation2 + $0x5ac] ss:$16 sps:$4 sm:$0xff]  }
  0x8d   :  { %1492 = vmatpush1.bf16.msra.mxu0 %v2708_v0  ;;  %1656 = vmatpush1.bf16.msra.mxu1 %v2711_v1  ;;  %v2798_v0 = vld [vmem:[#allocation2 + $0x5a0] ss:$16 sps:$4 sm:$0xff]   ;;  %v2801_v1 = vld [vmem:[#allocation2 + $0x5a8] ss:$16 sps:$4 sm:$0xff]  }
  0x8e   :  { %1493 = vmatprep.subr.bf16.mxu0 %v2716_v2  ;;  %1657 = vmatprep.subr.bf16.mxu1 %v2719_v3  ;;  %v2806_v2 = vld [vmem:[#allocation2 + $0x5c4] ss:$16 sps:$4 sm:$0xff]   ;;  %v2809_v3 = vld [vmem:[#allocation2 + $0x5cc] ss:$16 sps:$4 sm:$0xff]  }
  0x91   :  { %1494 = vmatpush1.bf16.msra.mxu0 %v2714_v4  ;;  %1658 = vmatpush1.bf16.msra.mxu1 %v2717_v5  ;;  %v2804_v4 = vld [vmem:[#allocation2 + $0x5c0] ss:$16 sps:$4 sm:$0xff]   ;;  %v2807_v5 = vld [vmem:[#allocation2 + $0x5c8] ss:$16 sps:$4 sm:$0xff]  }
  0x92   :  { %1504 = vmatprep.subr.bf16.mxu0 %v2722_v6  ;;  %1668 = vmatprep.subr.bf16.mxu1 %v2725_v8  ;;  %v2812_v6 = vld [vmem:[#allocation2 + $0x5e4] ss:$16 sps:$4 sm:$0xff]   ;;  %v2810_v8 = vld [vmem:[#allocation2 + $0x5e0] ss:$16 sps:$4 sm:$0xff]  }
  0x94   :  { %1496 = vmatmul.mubr.bf16.vlgmr.msra.gmra.mrb[0].mxu0 %v51_v11  ;;  %1660 = vmatmul.mubr.bf16.vlgmr.msra.gmra.mrb[0].mxu1 %v51_v11  ;;  %v2818_v11 = vld [vmem:[#allocation2 + $0x604] ss:$16 sps:$4 sm:$0xff]  }
  0x95   :  { %1505 = vmatpush1.bf16.msra.mxu0 %v2720_v9  ;;  %1669 = vmatpush1.bf16.msra.mxu1 %v2723_v10  ;;  %v2813_v9 = vld [vmem:[#allocation2 + $0x5e8] ss:$16 sps:$4 sm:$0xff]   ;;  %v46_v10 = vld [vmem:[%s3145_s0 + $0x20] sm:$0xff] }
  0x96   :  { %1506 = vmatprep.subr.bf16.mxu0 %v2728_v12  ;;  %1670 = vmatprep.subr.bf16.mxu1 %v2731_v13  ;;  %v2821_v12 = vld [vmem:[#allocation2 + $0x60c] ss:$16 sps:$4 sm:$0xff]   ;;  %v53_v13 = vpack.c.bf16 %v46_v10, %v46_v10  ;;  %v2891_v10 = vld [vmem:[%s3148_s3 + $0xb0] sm:$0xff]  }
  0x97   :  { %1536 = vmatprep.mubr.bf16.mxu0 %v54_v15  ;;  %1700 = vmatprep.mubr.bf16.mxu1 %v54_v15  ;;  %v2819_v15 = vld [vmem:[#allocation2 + $0x608] ss:$16 sps:$4 sm:$0xff]  }
  0x99   :  { %1507 = vmatpush1.bf16.msra.mxu0 %v2726_v16  ;;  %1671 = vmatpush1.bf16.msra.mxu1 %v2729_v17  ;;  %v2824_v16 = vld [vmem:[#allocation2 + $0x624] ss:$16 sps:$4 sm:$0xff]   ;;  %v2827_v17 = vld [vmem:[#allocation2 + $0x62c] ss:$16 sps:$4 sm:$0xff]  }
  0x9a   :  { %1508 = vmatprep.subr.bf16.mxu0 %v2734_v18  ;;  %1672 = vmatprep.subr.bf16.mxu1 %v2737_v19  ;;  %v2822_v18 = vld [vmem:[#allocation2 + $0x620] ss:$16 sps:$4 sm:$0xff]   ;;  %v2825_v19 = vld [vmem:[#allocation2 + $0x628] ss:$16 sps:$4 sm:$0xff]  }
  0x9d   :  { %1509 = vmatpush1.bf16.msra.mxu0 %v2732_v20  ;;  %1673 = vmatpush1.bf16.msra.mxu1 %v2735_v21  ;;  %v2830_v20 = vld [vmem:[#allocation2 + $0x644] ss:$16 sps:$4 sm:$0xff]   ;;  %v2833_v21 = vld [vmem:[#allocation2 + $0x64c] ss:$16 sps:$4 sm:$0xff]  }
  0x9e   :  { %1510 = vmatprep.subr.bf16.mxu0 %v2740_v22  ;;  %1674 = vmatprep.subr.bf16.mxu1 %v2743_v23  ;;  %v2948_v22 = vmov 0   ;;  %v2828_v23 = vld [vmem:[#allocation2 + $0x640] ss:$16 sps:$4 sm:$0xff]  }
  0xa1   :  { %1511 = vmatpush1.bf16.msra.mxu0 %v2738_v24  ;;  %1675 = vmatpush1.bf16.msra.mxu1 %v2741_v25  ;;  %v2831_v24 = vld [vmem:[#allocation2 + $0x648] ss:$16 sps:$4 sm:$0xff]   ;;  %v2836_v25 = vld [vmem:[#allocation2 + $0x664] ss:$16 sps:$4 sm:$0xff]  }
  0xa2   :  { %1512 = vmatprep.subr.bf16.mxu0 %v2746_v26  ;;  %1676 = vmatprep.subr.bf16.mxu1 %v2749_v27  ;;  %v2839_v26 = vld [vmem:[#allocation2 + $0x66c] ss:$16 sps:$4 sm:$0xff]   ;;  %v2834_v27 = vld [vmem:[#allocation2 + $0x660] ss:$16 sps:$4 sm:$0xff]  }
  0xa5   :  { %1513 = vmatpush1.bf16.msra.mxu0 %v2744_v28  ;;  %1677 = vmatpush1.bf16.msra.mxu1 %v2747_v29  ;;  %v2837_v28 = vld [vmem:[#allocation2 + $0x668] ss:$16 sps:$4 sm:$0xff]   ;;  %v2842_v29 = vld [vmem:[#allocation2 + $0x684] ss:$16 sps:$4 sm:$0xff]  }
  0xa6   :  { %1514 = vmatprep.subr.bf16.mxu0 %v2752_v30  ;;  %1678 = vmatprep.subr.bf16.mxu1 %v2755_v31  ;;  %v2845_v30 = vld [vmem:[#allocation2 + $0x68c] ss:$16 sps:$4 sm:$0xff]   ;;  %v2840_v31 = vld [vmem:[#allocation2 + $0x680] ss:$16 sps:$4 sm:$0xff]  }
  0xa9   :  { %1515 = vmatpush1.bf16.msra.mxu0 %v2750_v32  ;;  %1679 = vmatpush1.bf16.msra.mxu1 %v2753_v33  ;;  %v2843_v32 = vld [vmem:[#allocation2 + $0x688] ss:$16 sps:$4 sm:$0xff]   ;;  %v2848_v33 = vld [vmem:[#allocation2 + $0x6a4] ss:$16 sps:$4 sm:$0xff]  }
  0xaa   :  { %1516 = vmatprep.subr.bf16.mxu0 %v2758_v34  ;;  %1680 = vmatprep.subr.bf16.mxu1 %v2761_v35  ;;  %v2851_v34 = vld [vmem:[#allocation2 + $0x6ac] ss:$16 sps:$4 sm:$0xff]   ;;  %v2846_v35 = vld [vmem:[#allocation2 + $0x6a0] ss:$16 sps:$4 sm:$0xff]  }
  0xad   :  { %1517 = vmatpush1.bf16.msra.mxu0 %v2756_v36  ;;  %1681 = vmatpush1.bf16.msra.mxu1 %v2759_v37  ;;  %v2849_v36 = vld [vmem:[#allocation2 + $0x6a8] ss:$16 sps:$4 sm:$0xff]   ;;  %v2854_v37 = vld [vmem:[#allocation2 + $0x6c4] ss:$16 sps:$4 sm:$0xff]  }
  0xae   :  { %1518 = vmatprep.subr.bf16.mxu0 %v2764_v38  ;;  %1682 = vmatprep.subr.bf16.mxu1 %v2767_v39  ;;  %v2857_v38 = vld [vmem:[#allocation2 + $0x6cc] ss:$16 sps:$4 sm:$0xff]   ;;  %v2852_v39 = vld [vmem:[#allocation2 + $0x6c0] ss:$16 sps:$4 sm:$0xff]  }
  0xb1   :  { %1519 = vmatpush1.bf16.msra.mxu0 %v2762_v40  ;;  %1683 = vmatpush1.bf16.msra.mxu1 %v2765_v41  ;;  %v2855_v40 = vld [vmem:[#allocation2 + $0x6c8] ss:$16 sps:$4 sm:$0xff]   ;;  %v2860_v41 = vld [vmem:[#allocation2 + $0x6e4] ss:$16 sps:$4 sm:$0xff]  }
  0xb2   :  { %1520 = vmatprep.subr.bf16.mxu0 %v2770_v42  ;;  %1684 = vmatprep.subr.bf16.mxu1 %v2773_v43  ;;  %v2863_v42 = vld [vmem:[#allocation2 + $0x6ec] ss:$16 sps:$4 sm:$0xff]   ;;  %v2858_v43 = vld [vmem:[#allocation2 + $0x6e0] ss:$16 sps:$4 sm:$0xff]  }
  0xb5   :  { %1521 = vmatpush1.bf16.msra.mxu0 %v2768_v44  ;;  %1685 = vmatpush1.bf16.msra.mxu1 %v2771_v45  ;;  %v2861_v44 = vld [vmem:[#allocation2 + $0x6e8] ss:$16 sps:$4 sm:$0xff]   ;;  %v48_v45 = vld [vmem:[%s3145_s0 + $0x30] sm:$0xff] }
  0xb6   :  { %1522 = vmatprep.subr.bf16.mxu0 %v2776_v46  ;;  %1686 = vmatprep.subr.bf16.mxu1 %v2779_v47  ;;  %v2864_v46 = vld [vmem:[%s3148_s3 + $0x40] sm:$0xff]  }
  0xb7   :  { %v2865_v47 = vld [vmem:[%s3148_s3 + $0xc0] sm:$0xff]  }
  0xb9   :  { %1523 = vmatpush1.bf16.msra.mxu0 %v2774_v48  ;;  %1687 = vmatpush1.bf16.msra.mxu1 %v2777_v49  ;;  %v55_v48 = vpack.c.bf16 %v48_v45, %v48_v45  ;;  %v2866_v49 = vld [vmem:[%s3148_s3] sm:$0xff]  }
  0xba   :  { %1524 = vmatprep.subr.bf16.mxu0 %v2782_v50  ;;  %1688 = vmatprep.subr.bf16.mxu1 %v2785_v51  ;;  %v2867_v50 = vld [vmem:[%s3148_s3 + $0x80] sm:$0xff]   ;;  %v2868_v51 = vld [vmem:[%s3148_s3 + $0x48] sm:$0xff]  }
  0xbd   :  { %1525 = vmatpush1.bf16.msra.mxu0 %v2780_v52  ;;  %1689 = vmatpush1.bf16.msra.mxu1 %v2783_v53  ;;  %v2869_v52 = vld [vmem:[%s3148_s3 + $0xc8] sm:$0xff]  }
  0xbe   :  { %1526 = vmatprep.subr.bf16.mxu0 %v2788_v54  ;;  %1690 = vmatprep.subr.bf16.mxu1 %v2791_v55  ;;  %v2870_v53 = vld [vmem:[%s3148_s3 + $0x8] sm:$0xff]   ;;  %v2872_v55 = vld [vmem:[%s3148_s3 + $0x50] sm:$0xff]  }
  0xbf   :  { %v2871_v54 = vld [vmem:[%s3148_s3 + $0x88] sm:$0xff]  }
  0xc1   :  { %1527 = vmatpush1.bf16.msra.mxu0 %v2786_v56  ;;  %1691 = vmatpush1.bf16.msra.mxu1 %v2789_v57  ;;  %v2873_v56 = vld [vmem:[%s3148_s3 + $0xd0] sm:$0xff]  }
  0xc2   :  { %1528 = vmatprep.subr.bf16.mxu0 %v2794_v58  ;;  %1692 = vmatprep.subr.bf16.mxu1 %v2797_v59  ;;  %v2874_v57 = vld [vmem:[%s3148_s3 + $0x10] sm:$0xff]   ;;  %v2876_v59 = vld [vmem:[%s3148_s3 + $0x58] sm:$0xff]  }
  0xc3   :  { %v2875_v58 = vld [vmem:[%s3148_s3 + $0x90] sm:$0xff]  }
  0xc5   :  { %1529 = vmatpush1.bf16.msra.mxu0 %v2792_v60  ;;  %1693 = vmatpush1.bf16.msra.mxu1 %v2795_v61  ;;  %v2877_v60 = vld [vmem:[%s3148_s3 + $0xd8] sm:$0xff]  }
  0xc6   :  { %1530 = vmatprep.subr.bf16.mxu0 %v2800_v62  ;;  %1694 = vmatprep.subr.bf16.mxu1 %v2803_v63  ;;  %v2878_v61 = vld [vmem:[%s3148_s3 + $0x18] sm:$0xff]   ;;  %v2880_v63 = vld [vmem:[%s3148_s3 + $0x60] sm:$0xff]  }
  0xc7   :  { %v2879_v62 = vld [vmem:[%s3148_s3 + $0x98] sm:$0xff]  }
  0xc9   :  { %1531 = vmatpush1.bf16.msra.mxu0 %v2798_v0  ;;  %1695 = vmatpush1.bf16.msra.mxu1 %v2801_v1  ;;  %v2881_v0 = vld [vmem:[%s3148_s3 + $0xe0] sm:$0xff]  }
  0xca   :  { %1532 = vmatprep.subr.bf16.mxu0 %v2806_v2  ;;  %1696 = vmatprep.subr.bf16.mxu1 %v2809_v3  ;;  %v2882_v1 = vld [vmem:[%s3148_s3 + $0x20] sm:$0xff]   ;;  %v2884_v3 = vld [vmem:[%s3148_s3 + $0x68] sm:$0xff]  }
  0xcb   :  { %v2883_v2 = vld [vmem:[%s3148_s3 + $0xa0] sm:$0xff]  }
  0xcd   :  { %1533 = vmatpush1.bf16.msra.mxu0 %v2804_v4  ;;  %1697 = vmatpush1.bf16.msra.mxu1 %v2807_v5  ;;  %v2885_v4 = vld [vmem:[%s3148_s3 + $0xe8] sm:$0xff]  }
  0xce   :  { %1534 = vmatprep.subr.bf16.mxu0 %v2812_v6  ;;  %1698 = vmatprep.subr.bf16.mxu1 %v2815_v7  ;;  %v2886_v5 = vld [vmem:[%s3148_s3 + $0x28] sm:$0xff]   ;;  %v2888_v7 = vld [vmem:[%s3148_s3 + $0x70] sm:$0xff]  }
  0xcf   :  { %v2887_v6 = vld [vmem:[%s3148_s3 + $0xa8] sm:$0xff]  }
  0xd1   :  { %1535 = vmatpush1.bf16.msra.mxu0 %v2810_v8  ;;  %1699 = vmatpush1.bf16.msra.mxu1 %v2813_v9  ;;  %v2889_v8 = vld [vmem:[%s3148_s3 + $0xf0] sm:$0xff]  }
  0xd2   :  { %1545 = vmatprep.subr.bf16.mxu0 %v2818_v11  ;;  %1709 = vmatprep.subr.bf16.mxu1 %v2821_v12  ;;  %v2890_v9 = vld [vmem:[%s3148_s3 + $0x30] sm:$0xff]   ;;  %v2892_v11 = vld [vmem:[%s3148_s3 + $0x78] sm:$0xff]  }
  0xd3   :  { %v2893_v12 = vld [vmem:[%s3148_s3 + $0xf8] sm:$0xff]  }
  0xd4   :  { %1537 = vmatmul.mubr.bf16.vlgmr.msra.gmra.mrb[0].mxu0 %v53_v13  ;;  %1701 = vmatmul.mubr.bf16.vlgmr.msra.gmra.mrb[0].mxu1 %v53_v13  ;;  %v2894_v13 = vld [vmem:[%s3148_s3 + $0x38] sm:$0xff]  }
  0xd5   :  { %1546 = vmatpush1.bf16.msra.mxu0 %v2816_v14  ;;  %1710 = vmatpush1.bf16.msra.mxu1 %v2819_v15  ;;  %v2895_v14 = vld [vmem:[%s3148_s3 + $0xb8] sm:$0xff]   ;;  %v282_v15 = vlaneseq }
  0xd6   :  { %1547 = vmatprep.subr.bf16.mxu0 %v2824_v16  ;;  %1711 = vmatprep.subr.bf16.mxu1 %v2827_v17 }
  0xd7   :  { %1577 = vmatprep.mubr.bf16.mxu0 %v2948_v22  ;;  %1741 = vmatprep.mubr.bf16.mxu1 %v2948_v22  ;;  %v283_v16 = vshrl.u32 %v282_v15, 7 }
  0xd9   :  { %1548 = vmatpush1.bf16.msra.mxu0 %v2822_v18  ;;  %1712 = vmatpush1.bf16.msra.mxu1 %v2825_v19  ;;  %v284_v17 = vsub.s32 0, %v283_v16  ;;  %v292_v18 = vsub.s32 2, %v283_v16  ;;  %v280_v19 = vld [vmem:[%s3147_s2] sm:$0xf] }
  0xda   :  { %1549 = vmatprep.subr.bf16.mxu0 %v2830_v20  ;;  %1713 = vmatprep.subr.bf16.mxu1 %v2833_v21  ;;  %v288_v20 = vsub.s32 1, %v283_v16  ;;  %v296_v21 = vsub.s32 3, %v283_v16 }
  0xdb   :  { %v285_v22 = vrot.slane %v280_v19, %v284_v17 }
  0xdd   :  { %1550 = vmatpush1.bf16.msra.mxu0 %v2828_v23  ;;  %1714 = vmatpush1.bf16.msra.mxu1 %v2831_v24  ;;  %v293_v23 = vrot.slane %v280_v19, %v292_v18  ;;  %v289_v24 = vrot.slane %v280_v19, %v288_v20 }
  0xde   :  { %1551 = vmatprep.subr.bf16.mxu0 %v2836_v25  ;;  %1715 = vmatprep.subr.bf16.mxu1 %v2839_v26  ;;  %v297_v25 = vrot.slane %v280_v19, %v296_v21 }
  0xe1   :  { %1552 = vmatpush1.bf16.msra.mxu0 %v2834_v27  ;;  %1716 = vmatpush1.bf16.msra.mxu1 %v2837_v28 }
  0xe2   :  { %1553 = vmatprep.subr.bf16.mxu0 %v2842_v29  ;;  %1717 = vmatprep.subr.bf16.mxu1 %v2845_v30 }
  0xe5   :  { %1554 = vmatpush1.bf16.msra.mxu0 %v2840_v31  ;;  %1718 = vmatpush1.bf16.msra.mxu1 %v2843_v32 }
  0xe6   :  { %1555 = vmatprep.subr.bf16.mxu0 %v2848_v33  ;;  %1719 = vmatprep.subr.bf16.mxu1 %v2851_v34 }
  0xe9   :  { %1556 = vmatpush1.bf16.msra.mxu0 %v2846_v35  ;;  %1720 = vmatpush1.bf16.msra.mxu1 %v2849_v36 }
  0xea   :  { %1557 = vmatprep.subr.bf16.mxu0 %v2854_v37  ;;  %1721 = vmatprep.subr.bf16.mxu1 %v2857_v38 }
  0xed   :  { %1558 = vmatpush1.bf16.msra.mxu0 %v2852_v39  ;;  %1722 = vmatpush1.bf16.msra.mxu1 %v2855_v40 }
  0xee   :  { %1559 = vmatprep.subr.bf16.mxu0 %v2860_v41  ;;  %1723 = vmatprep.subr.bf16.mxu1 %v2863_v42 }
  0xf1   :  { %1560 = vmatpush1.bf16.msra.mxu0 %v2858_v43  ;;  %1724 = vmatpush1.bf16.msra.mxu1 %v2861_v44 }
  0xf2   :  { %2441 = vmatprep.subr.bf16.mxu0 %v2864_v46  ;;  %2463 = vmatprep.subr.bf16.mxu1 %v2865_v47  ;;  %v2896_v46 = vld [vmem:[%s3150_s5] sm:$0x1f]   ;;  %v2949_v47 = vmov 0.0  }
  0xf4   :  { %1578 = vmatmul.mubr.bf16.vlgmr.msra.gmra.mrb[0].mxu0 %v55_v48  ;;  %1742 = vmatmul.mubr.bf16.vlgmr.msra.gmra.mrb[0].mxu1 %v55_v48  ;;  %v2123_v48 = vsel %vm2121_vm0, %v2896_v46, 0 }
  0xf5   :  { %2442 = vmatpush3.bf16.msra.mxu0 %v2866_v49  ;;  %2464 = vmatpush3.bf16.msra.mxu1 %v2867_v50 }
  0xf6   :  { %2443 = vmatprep.subr.bf16.mxu0 %v2868_v51  ;;  %2465 = vmatprep.subr.bf16.mxu1 %v2869_v52  ;;  %v2405_v51 = vld [vmem:[%s3149_s4] ss:$0 sm:$0xff]  ;;  %s2172_s4 = sshll.u32 %s2951_s22, 4  ;;  %s2173_s4 = int_to_ptr.vmem [resolvable:$true] %s2172_s4 }
  0xf7   :  { %s2919_s23 = scalar_lea.vmem %s2173_s4, 128  ;;  %p2924_p9 = scmp.lt.s32.totalorder %s2173_s4, %s2173_s4 }
  0xf8   :  { %p2920_p8 = scmp.ne.s32.totalorder %s2173_s4, %s2919_s23  ;;  %p2925_p10 = scmp.lt.s32.totalorder %s2919_s23, %s2919_s23 }
  0xf9   :  { %2444 = vmatpush3.bf16.msra.mxu0 %v2870_v53  ;;  %2466 = vmatpush3.bf16.msra.mxu1 %v2871_v54 }
  0xfa   :  { %2445 = vmatprep.subr.bf16.mxu0 %v2872_v55  ;;  %2467 = vmatprep.subr.bf16.mxu1 %v2873_v56  ;;  %p2926_p11 = por %p2925_p10, %p2924_p9 }
  0xfc   :  { %p2927_p12 = pnand %p2926_p11, %p2920_p8 }
  0xfd   :  { %2446 = vmatpush3.bf16.msra.mxu0 %v2874_v57  ;;  %2468 = vmatpush3.bf16.msra.mxu1 %v2875_v58 }
  0xfe   :  { %2447 = vmatprep.subr.bf16.mxu0 %v2876_v59  ;;  %2469 = vmatprep.subr.bf16.mxu1 %v2877_v60 }
 0x101   :  { %2448 = vmatpush3.bf16.msra.mxu0 %v2878_v61  ;;  %2470 = vmatpush3.bf16.msra.mxu1 %v2879_v62 }
 0x102   :  { %2449 = vmatprep.subr.bf16.mxu0 %v2880_v63  ;;  %2471 = vmatprep.subr.bf16.mxu1 %v2881_v0  ;;  %v2438_v0 = vld [vmem:[%s3151_s6] ss:$0 sm:$0xff] }
 0x105   :  { %2450 = vmatpush3.bf16.msra.mxu0 %v2882_v1  ;;  %2472 = vmatpush3.bf16.msra.mxu1 %v2883_v2 }
 0x106   :  { %2451 = vmatprep.subr.bf16.mxu0 %v2884_v3  ;;  %2473 = vmatprep.subr.bf16.mxu1 %v2885_v4 }
 0x109   :  { %2452 = vmatpush3.bf16.msra.mxu0 %v2886_v5  ;;  %2474 = vmatpush3.bf16.msra.mxu1 %v2887_v6 }
 0x10a   :  { %2453 = vmatprep.subr.bf16.mxu0 %v2888_v7  ;;  %2475 = vmatprep.subr.bf16.mxu1 %v2889_v8 }
 0x10d   :  { %2454 = vmatpush3.bf16.msra.mxu0 %v2890_v9  ;;  %2476 = vmatpush3.bf16.msra.mxu1 %v2891_v10 }
 0x10e   :  { %2455 = vmatprep.subr.bf16.mxu0 %v2892_v11  ;;  %2477 = vmatprep.subr.bf16.mxu1 %v2893_v12 }
 0x111   :  { %2456 = vmatpush3.bf16.msra.mxu0 %v2894_v13  ;;  %2478 = vmatpush3.bf16.msra.mxu1 %v2895_v14 }
 0x112   :  { %2487 = vmatprep.subr.bf16.mxu0 %v2949_v47 }
 0x1c7   :  { %v1579_v26 = vpop.f32.mrb[0].mxu0  ;;  %v1743_v27 = vpop.f32.mrb[0].mxu1 }
 0x1c8   :  { %v2493_v28 = vadd.f32 %v1579_v26, %v285_v22  ;;  %v2495_v29 = vadd.f32 %v1743_v27, %v293_v23  ;;  %v1581_v30 = vpop.f32.mrb[1].mxu0  ;;  %v1745_v31 = vpop.f32.mrb[1].mxu1 }
 0x1c9   :  { %v2494_v32 = vadd.f32 %v1581_v30, %v289_v24  ;;  %v2496_v33 = vadd.f32 %v1745_v31, %v297_v25  ;;  %v1583_v34 = vpop.f32.mrb[2].mxu0  ;;  %v1747_v35 = vpop.f32.mrb[2].mxu1 }
 0x1ca   :  { %v1750_v36 = vmax.f32 %v2493_v28, 0.0  ;;  %v1752_v37 = vmax.f32 %v2495_v29, 0.0  ;;  %v1584_v38 = vpop.f32.mrb[3].mxu0  ;;  %v1748_v39 = vpop.f32.mrb[3].mxu1 }
 0x1cb   :  { %v1751_v40 = vmax.f32 %v2494_v32, 0.0  ;;  %v1753_v41 = vmax.f32 %v2496_v33, 0.0 }
 0x1cc   :  { %v1754_v44 = vpack.c.bf16 %v1750_v36, %v1750_v36  ;;  %v1756_v45 = vpack.c.bf16 %v1752_v37, %v1752_v37 }
 0x1cd   :  { %v1755_v42 = vpack.c.bf16 %v1751_v40, %v1751_v40  ;;  %v1757_v43 = vpack.c.bf16 %v1753_v41, %v1753_v41 }
 0x1cf   :  { %2053 = vmatprep.mubr.bf16.mxu0 %v1755_v42  ;;  %2093 = vmatprep.mubr.bf16.mxu1 %v1757_v43 }
 0x1d0   :  { %2054 = vmatmul.mubr.bf16.vlgmr.msra.gmra.mrb[4].mxu0 %v1754_v44  ;;  %2094 = vmatmul.mubr.bf16.vlgmr.msra.gmra.mrb[4].mxu1 %v1756_v45 }
 0x1d1   :  { %2488 = vmatpush3.bf16.msra.mxu0 %v2123_v48  ;;  %2489 = vmatprep.mubr.msk.bf16.mxu0 %vm2950_vm1, %v2949_v47 }
 0x2a3   :  { %v2457_v49 = vpop.f32.mrb[4].mxu0  ;;  %v2479_v50 = vpop.f32.mrb[4].mxu1 }
 0x2a4   :  { %v2458_v52 = vpop.f32.mrb[5].mxu0  ;;  %v2480_v53 = vpop.f32.mrb[5].mxu1 }
 0x2a5   :  { %v2459_v54 = vadd.f32 %v2458_v52, %v2457_v49  ;;  %v2481_v55 = vadd.f32 %v2480_v53, %v2479_v50  ;;  %v2460_v56 = vpop.f32.mrb[6].mxu0  ;;  %v2482_v57 = vpop.f32.mrb[6].mxu1 }
 0x2a6   :  { %v2461_v58 = vpop.f32.mrb[7].mxu0  ;;  %v2483_v59 = vpop.f32.mrb[7].mxu1 }
 0x2a7   :  { %v2056_v60 = vadd.f32 %v2459_v54, %v2405_v51 }
 0x2a9   :  { %v2096_v61 = vadd.f32 %v2481_v55, %v2056_v60 }
 0x2ab   :  { %v2101_v62 = vmax.f32 %v2096_v61, 0.0 }
 0x2ad   :  { %v2102_v63 = vpack.c.bf16 %v2101_v62, %v2101_v62 }
 0x2af   :  { %2490 = vmatmul.mubr.msk.bf16.vlgmr.msra.gmra.mrb[8].mxu0 %vm2117_vm2, %v2102_v63 }
 0x382   :  { %v2159_v1 = vpop.f32.mrb[8].mxu0 }
 0x383   :  { %v2160_v2 = vadd.f32 %v2438_v0, %v2159_v1  ;;  %v2491_v3 = vpop.f32.mrb[9].mxu0 }
 0x384   :  { %v2162_v4 = vpop.f32.mrb[10].mxu0 }
 0x385   :  { %2165 = vst.msk [vmem:[#allocation5] sm:$0xff] %vm2117_vm2, %v2160_v2  ;;  %v2492_v5 = vpop.f32.mrb[11].mxu0 }
 0x386   :  { %2930 = shalt.err (!%p2927_p12)
}
 0x387   :  { %s2931_s6 = scalar_lea.hbm %s3152_s7, 128 }
 0x388   :  { %p2932_p13 = scmp.ne.s32.totalorder %s3152_s7, %s2931_s6  ;;  %p2935_p0 = scmp.lt.u32.totalorder %s2931_s6, %s3152_s7 }
 0x38a   :  { %p2937_p1 = pnand %p2935_p0, %p2932_p13 }
 0x38c   :  { %2940 = shalt.err (!%p2937_p1)
}
 0x38d   :  { %2175 = dma.vmem_to_hbm [thread:$0]  %s2173_s4, 128, %s3152_s7, [#allocation4]  }
 0x38e   :  { %2943 = dma.done.wait [#allocation4], 128  }
 0x38f   :  { %2944 = vsyncadd [#allocation4], 4294967168 }
 0x390   :  { %2179 = vsyncpa [#allocation3], 1 }
 0x391   :  { %2180 = vsyncpa [#allocation4], 1 }

</bundles_post_ra>
